<compile_context>
chip_gen: v6e
topology: v6e:2x2x1
jax: 0.10.0
libtpu: 0.0.40
codegen_flags: <defaults>
</compile_context>

<pallas_src>
import functools

import jax
import jax.numpy as jnp
from jax.experimental import pallas as pl
from jax.experimental.pallas import tpu as pltpu


# --------------------------------- kernel -----------------------------------

def _fill_neighbour_kernel(k_ref, m_ref, o_ref, *,
                           frame_dist, clipped, divide_by_n):
    """Per-(batch, S-tile) block.

    k_ref : (1, 2, nt, ts)      k-space tile (real/imag)
    m_ref : (1, 2, nt, ts)      sampling-mask tile
    o_ref : (1, L, 2, nt, ts)   output, one slab per frame distance
    """
    max_d = max(frame_dist)
    order = sorted(range(len(frame_dist)), key=lambda i: frame_dist[i])
    nt = k_ref.shape[2]
    ts = k_ref.shape[3]
    one = jnp.float32(1.0)

    # Hoisted per-distance reciprocal window counts (divide_by_n path only).
    inv_cnt = {}
    if divide_by_n:
        for d in sorted(set(frame_dist)):
            if clipped:
                t = jax.lax.broadcasted_iota(jnp.int32, (nt, 1), 0)
                cnt = (jnp.minimum(t + d, nt - 1)
                       - jnp.maximum(t - d, 0) + 1).astype(jnp.float32)
                inv_cnt[d] = one / cnt                      # (nt, 1)
            else:
                inv_cnt[d] = jnp.float32(1.0 / (2 * d + 1))  # scalar

    for c in range(k_ref.shape[1]):          # real / imag channel
        kk = k_ref[0, c]                     # (nt, ts)
        mm = m_ref[0, c]                     # (nt, ts)

        # Time-padded copies built entirely in VMEM (no HBM pad pass).
        if max_d > 0:
            if clipped:                      # zero padding (Conv3d padding)
                z = jnp.zeros((max_d, ts), kk.dtype)
                kp = jnp.concatenate([z, kk, z], axis=0)
                mp = None if divide_by_n else jnp.concatenate([z, mm, z], axis=0)
            else:                            # circular wrap (torch.cat path)
                kp = jnp.concatenate([kk[nt - max_d:], kk, kk[:max_d]], axis=0)
                mp = (None if divide_by_n else
                      jnp.concatenate([mm[nt - max_d:], mm, mm[:max_d]], axis=0))
        else:
            kp = kk
            mp = None if divide_by_n else mm

        # Incremental box sums over increasing frame distance.
        num = kk
        den = None if divide_by_n else mm
        prev_d = 0
        for oi in order:
            d = frame_dist[oi]
            for j in range(prev_d + 1, d + 1):
                num = (num
                       + kp[max_d - j: max_d - j + nt]
                       + kp[max_d + j: max_d + j + nt])
                if not divide_by_n:
                    den = (den
                           + mp[max_d - j: max_d - j + nt]
                           + mp[max_d + j: max_d + j + nt])
            prev_d = d

            if divide_by_n:
                res = num * inv_cnt[d]
            else:
                res = num / jnp.maximum(den, one)            # clamp(min=1)

            # data consistency: (1-m)*res + m*k  ==  res + m*(k - res)
            o_ref[0, oi, c, :, :] = (res + mm * (kk - res)).astype(o_ref.dtype)


# -------------------------------- wrapper ------------------------------------

def _pick_s_tile(S, nt, L, budget_bytes=12 * 1024 * 1024):
    """Choose a lane-tile width.

    Returns (ts, S_pad). ts is the full S (always a legal block shape) when it
    fits the VMEM budget, otherwise the largest multiple-of-128 divisor of S
    within the budget. If no such divisor exists, S is padded up so a
    multiple-of-128 tile divides it (extra lanes are sliced off afterwards).
    """
    # per lane: (2 input + L output) f32 blocks x 2 r/i channels x nt rows,
    # double-buffered by the pipeline.
    bytes_per_lane = 4 * nt * 2 * (2 + L) * 2
    ts_max = max(128, (budget_bytes // max(bytes_per_lane, 1)) // 128 * 128)
    if S <= ts_max:
        return S, S
    t = ts_max
    while t >= 128:
        if S % t == 0:
            return t, S
        t -= 128
    ts = ts_max
    return ts, ((S + ts - 1) // ts) * ts


def kspace_fill_neighbour(k, mask, frame_dist=(0, 1, 2),
                          divide_by_n=False, clipped=True):
    """Pallas implementation of KspaceFillNeighbourLayer.perform."""
    frame_dist = tuple(int(d) for d in frame_dist)
    if 0 not in frame_dist:
        raise ValueError("There suppose to be a 0 in frame_dist!")
    n, c, nt, nx, ny = k.shape
    assert c == 2
    L = len(frame_dist)
    S = nx * ny

    # View-like reshapes only (no transposes).
    kf = k.reshape(n, 2, nt, S).astype(jnp.float32)
    mf = mask.reshape(n, 2, nt, S).astype(jnp.float32)

    ts, S_pad = _pick_s_tile(S, nt, L)
    if S_pad != S:
        pad = S_pad - S
        kf = jnp.pad(kf, ((0, 0), (0, 0), (0, 0), (0, pad)))
        mf = jnp.pad(mf, ((0, 0), (0, 0), (0, 0), (0, pad)))

    grid = (n, S_pad // ts)

    kernel = functools.partial(_fill_neighbour_kernel,
                               frame_dist=frame_dist,
                               clipped=clipped,
                               divide_by_n=divide_by_n)

    out = pl.pallas_call(
        kernel,
        out_shape=jax.ShapeDtypeStruct((n, L, 2, nt, S_pad), jnp.float32),
        grid=grid,
        in_specs=[
            pl.BlockSpec((1, 2, nt, ts), lambda b, s: (b, 0, 0, s)),
            pl.BlockSpec((1, 2, nt, ts), lambda b, s: (b, 0, 0, s)),
        ],
        out_specs=pl.BlockSpec((1, L, 2, nt, ts),
                               lambda b, s: (b, 0, 0, 0, s)),
        compiler_params=pltpu.CompilerParams(
            dimension_semantics=("parallel", "parallel"),
            vmem_limit_bytes=32 * 1024 * 1024),
    )(kf, mf)

    if S_pad != S:
        out = out[..., :S]

    # (n, L, 2, nt, S) -> (n, L, 2, nt, nx, ny)  (last-dim split, no copy)
    return out.reshape(n, L, 2, nt, nx, ny)


# --------------- pure-jnp reference (faithful port of the graph) -------------

def kspace_fill_neighbour_ref(k, mask, frame_dist=(0, 1, 2),
                              divide_by_n=False, clipped=True):
    frame_dist = tuple(frame_dist)
    n, c, nt, nx, ny = k.shape
    k = k.astype(jnp.float32)
    mask = mask.astype(jnp.float32)
    outs = []
    for d in frame_dist:
        den_src = jnp.ones_like(mask) if divide_by_n else mask
        if clipped or d == 0:
            kp = jnp.pad(k, ((0, 0), (0, 0), (d, d), (0, 0), (0, 0)))
            sp = jnp.pad(den_src, ((0, 0), (0, 0), (d, d), (0, 0), (0, 0)))
        else:
            kp = jnp.concatenate([k[:, :, nt - d:], k, k[:, :, :d]], axis=2)
            sp = jnp.concatenate([den_src[:, :, nt - d:], den_src,
                                  den_src[:, :, :d]], axis=2)
        num = sum(kp[:, :, j:j + nt] for j in range(2 * d + 1))
        den = sum(sp[:, :, j:j + nt] for j in range(2 * d + 1))
        res = num / jnp.maximum(den, 1.0)
        outs.append((1.0 - mask) * res + mask * k)
    out = jnp.stack(outs, axis=1)                    # (n, L, 2, nt, nx, ny)
    return out


# --------------------------------- test --------------------------------------

if __name__ == "__main__":
    key = jax.random.PRNGKey(0)
    k_key, m_key = jax.random.split(key)

    n, c, nt, nx, ny = 2, 2, 8, 16, 16
    frame_dist = (0, 1, 2)

    k = jax.random.normal(k_key, (n, c, nt, nx, ny), dtype=jnp.float32)
    # undersampling mask: binary, shared across real/imag channels and ky
    mask_lines = (jax.random.uniform(m_key, (n, 1, nt, nx, 1)) < 0.35)
    mask = jnp.broadcast_to(mask_lines, (n, c, nt, nx, ny)).astype(jnp.float32)

    configs = [
        dict(divide_by_n=False, clipped=True),    # module defaults
        dict(divide_by_n=False, clipped=False),   # circular temporal wrap
        dict(divide_by_n=True, clipped=True),     # divide by window count
    ]
    for cfg in configs:
        out = kspace_fill_neighbour(k, mask, frame_dist, **cfg)
        out = jax.block_until_ready(out)
        assert out.shape == (n, len(frame_dist), 2, nt, nx, ny)

        ref = kspace_fill_neighbour_ref(k, mask, frame_dist, **cfg)
        err = float(jnp.max(jnp.abs(out - ref)))
        assert err < 1e-5, f"mismatch vs reference for {cfg}: {err}"

    print("KERNEL_OK")
</pallas_src>

<mosaic_0001>
module attributes {stable_mosaic.version = 11 : i64} {
  func.func @_fill_neighbour_kernel(%arg0: i32, %arg1: i32, %arg2: memref<1x2x8x256xf32, #tpu.memory_space<vmem>>, %arg3: memref<1x2x8x256xf32, #tpu.memory_space<vmem>>, %arg4: memref<1x3x2x8x256xf32, #tpu.memory_space<vmem>>) attributes {dimension_semantics = [#tpu.dimension_semantics<parallel>, #tpu.dimension_semantics<parallel>], iteration_bounds = array<i64: 2, 1>, scalar_prefetch = 0 : i64, scratch_operands = 0 : i64, tpu.core_type = #tpu.core_type<tc>, window_params = [{transform_indices = @transform_0, window_bounds = array<i64: 1, 2, 8, 256>}, {transform_indices = @transform_1, window_bounds = array<i64: 1, 2, 8, 256>}, {transform_indices = @transform_2, window_bounds = array<i64: 1, 3, 2, 8, 256>}]} {
    %c0 = arith.constant 0 : index
    %c0_0 = arith.constant 0 : index
    %c0_1 = arith.constant 0 : index
    %c0_2 = arith.constant 0 : index
    %0 = vector.load %arg2[%c0, %c0_0, %c0_1, %c0_2] : memref<1x2x8x256xf32, #tpu.memory_space<vmem>>, vector<1x1x8x256xf32>
    %1 = vector.shape_cast %0 : vector<1x1x8x256xf32> to vector<8x256xf32>
    %c0_3 = arith.constant 0 : index
    %c0_4 = arith.constant 0 : index
    %c0_5 = arith.constant 0 : index
    %c0_6 = arith.constant 0 : index
    %2 = vector.load %arg3[%c0_3, %c0_4, %c0_5, %c0_6] : memref<1x2x8x256xf32, #tpu.memory_space<vmem>>, vector<1x1x8x256xf32>
    %3 = vector.shape_cast %2 : vector<1x1x8x256xf32> to vector<8x256xf32>
    %cst = arith.constant 0.000000e+00 : f32
    %4 = vector.broadcast %cst : f32 to vector<2x256xf32>
    %5 = tpu.concatenate %4, %1, %4 in 0 : vector<2x256xf32>, vector<8x256xf32>, vector<2x256xf32> -> vector<12x256xf32>
    %6 = tpu.concatenate %4, %3, %4 in 0 : vector<2x256xf32>, vector<8x256xf32>, vector<2x256xf32> -> vector<12x256xf32>
    %cst_7 = arith.constant 1.000000e+00 : f32
    %7 = vector.broadcast %cst_7 : f32 to vector<8x256xf32>
    %8 = arith.maximumf %3, %7 : vector<8x256xf32>
    %9 = arith.divf %1, %8 : vector<8x256xf32>
    %10 = arith.subf %1, %9 : vector<8x256xf32>
    %11 = arith.mulf %3, %10 : vector<8x256xf32>
    %12 = arith.addf %9, %11 : vector<8x256xf32>
    %c0_8 = arith.constant 0 : index
    %c0_9 = arith.constant 0 : index
    %c0_10 = arith.constant 0 : index
    %c0_11 = arith.constant 0 : index
    %c0_12 = arith.constant 0 : index
    %13 = vector.load %arg4[%c0_8, %c0_9, %c0_10, %c0_11, %c0_12] : memref<1x3x2x8x256xf32, #tpu.memory_space<vmem>>, vector<1x1x1x8x256xf32>
    %14 = vector.shape_cast %13 : vector<1x1x1x8x256xf32> to vector<8x256xf32>
    %15 = vector.shape_cast %12 : vector<8x256xf32> to vector<1x1x1x8x256xf32>
    tpu.vector_store %arg4[%c0_8, %c0_9, %c0_10, %c0_11, %c0_12], %15 {strides = array<i32>} : memref<1x3x2x8x256xf32, #tpu.memory_space<vmem>>, vector<1x1x1x8x256xf32>,
    %16 = vector.extract_strided_slice %5 {offsets = [1, 0], sizes = [8, 256], strides = [1, 1]} : vector<12x256xf32> to vector<8x256xf32>
    %17 = arith.addf %1, %16 : vector<8x256xf32>
    %18 = vector.extract_strided_slice %5 {offsets = [3, 0], sizes = [8, 256], strides = [1, 1]} : vector<12x256xf32> to vector<8x256xf32>
    %19 = arith.addf %17, %18 : vector<8x256xf32>
    %20 = vector.extract_strided_slice %6 {offsets = [1, 0], sizes = [8, 256], strides = [1, 1]} : vector<12x256xf32> to vector<8x256xf32>
    %21 = arith.addf %3, %20 : vector<8x256xf32>
    %22 = vector.extract_strided_slice %6 {offsets = [3, 0], sizes = [8, 256], strides = [1, 1]} : vector<12x256xf32> to vector<8x256xf32>
    %23 = arith.addf %21, %22 : vector<8x256xf32>
    %cst_13 = arith.constant 1.000000e+00 : f32
    %24 = vector.broadcast %cst_13 : f32 to vector<8x256xf32>
    %25 = arith.maximumf %23, %24 : vector<8x256xf32>
    %26 = arith.divf %19, %25 : vector<8x256xf32>
    %27 = arith.subf %1, %26 : vector<8x256xf32>
    %28 = arith.mulf %3, %27 : vector<8x256xf32>
    %29 = arith.addf %26, %28 : vector<8x256xf32>
    %c0_14 = arith.constant 0 : index
    %c1 = arith.constant 1 : index
    %c0_15 = arith.constant 0 : index
    %c0_16 = arith.constant 0 : index
    %c0_17 = arith.constant 0 : index
    %30 = vector.load %arg4[%c0_14, %c1, %c0_15, %c0_16, %c0_17] : memref<1x3x2x8x256xf32, #tpu.memory_space<vmem>>, vector<1x1x1x8x256xf32>
    %31 = vector.shape_cast %30 : vector<1x1x1x8x256xf32> to vector<8x256xf32>
    %32 = vector.shape_cast %29 : vector<8x256xf32> to vector<1x1x1x8x256xf32>
    tpu.vector_store %arg4[%c0_14, %c1, %c0_15, %c0_16, %c0_17], %32 {strides = array<i32>} : memref<1x3x2x8x256xf32, #tpu.memory_space<vmem>>, vector<1x1x1x8x256xf32>,
    %33 = vector.extract_strided_slice %5 {offsets = [0, 0], sizes = [8, 256], strides = [1, 1]} : vector<12x256xf32> to vector<8x256xf32>
    %34 = arith.addf %19, %33 : vector<8x256xf32>
    %35 = vector.extract_strided_slice %5 {offsets = [4, 0], sizes = [8, 256], strides = [1, 1]} : vector<12x256xf32> to vector<8x256xf32>
    %36 = arith.addf %34, %35 : vector<8x256xf32>
    %37 = vector.extract_strided_slice %6 {offsets = [0, 0], sizes = [8, 256], strides = [1, 1]} : vector<12x256xf32> to vector<8x256xf32>
    %38 = arith.addf %23, %37 : vector<8x256xf32>
    %39 = vector.extract_strided_slice %6 {offsets = [4, 0], sizes = [8, 256], strides = [1, 1]} : vector<12x256xf32> to vector<8x256xf32>
    %40 = arith.addf %38, %39 : vector<8x256xf32>
    %cst_18 = arith.constant 1.000000e+00 : f32
    %41 = vector.broadcast %cst_18 : f32 to vector<8x256xf32>
    %42 = arith.maximumf %40, %41 : vector<8x256xf32>
    %43 = arith.divf %36, %42 : vector<8x256xf32>
    %44 = arith.subf %1, %43 : vector<8x256xf32>
    %45 = arith.mulf %3, %44 : vector<8x256xf32>
    %46 = arith.addf %43, %45 : vector<8x256xf32>
    %c0_19 = arith.constant 0 : index
    %c2 = arith.constant 2 : index
    %c0_20 = arith.constant 0 : index
    %c0_21 = arith.constant 0 : index
    %c0_22 = arith.constant 0 : index
    %47 = vector.load %arg4[%c0_19, %c2, %c0_20, %c0_21, %c0_22] : memref<1x3x2x8x256xf32, #tpu.memory_space<vmem>>, vector<1x1x1x8x256xf32>
    %48 = vector.shape_cast %47 : vector<1x1x1x8x256xf32> to vector<8x256xf32>
    %49 = vector.shape_cast %46 : vector<8x256xf32> to vector<1x1x1x8x256xf32>
    tpu.vector_store %arg4[%c0_19, %c2, %c0_20, %c0_21, %c0_22], %49 {strides = array<i32>} : memref<1x3x2x8x256xf32, #tpu.memory_space<vmem>>, vector<1x1x1x8x256xf32>,
    %c0_23 = arith.constant 0 : index
    %c1_24 = arith.constant 1 : index
    %c0_25 = arith.constant 0 : index
    %c0_26 = arith.constant 0 : index
    %50 = vector.load %arg2[%c0_23, %c1_24, %c0_25, %c0_26] : memref<1x2x8x256xf32, #tpu.memory_space<vmem>>, vector<1x1x8x256xf32>
    %51 = vector.shape_cast %50 : vector<1x1x8x256xf32> to vector<8x256xf32>
    %c0_27 = arith.constant 0 : index
    %c1_28 = arith.constant 1 : index
    %c0_29 = arith.constant 0 : index
    %c0_30 = arith.constant 0 : index
    %52 = vector.load %arg3[%c0_27, %c1_28, %c0_29, %c0_30] : memref<1x2x8x256xf32, #tpu.memory_space<vmem>>, vector<1x1x8x256xf32>
    %53 = vector.shape_cast %52 : vector<1x1x8x256xf32> to vector<8x256xf32>
    %cst_31 = arith.constant 0.000000e+00 : f32
    %54 = vector.broadcast %cst_31 : f32 to vector<2x256xf32>
    %55 = tpu.concatenate %54, %51, %54 in 0 : vector<2x256xf32>, vector<8x256xf32>, vector<2x256xf32> -> vector<12x256xf32>
    %56 = tpu.concatenate %54, %53, %54 in 0 : vector<2x256xf32>, vector<8x256xf32>, vector<2x256xf32> -> vector<12x256xf32>
    %cst_32 = arith.constant 1.000000e+00 : f32
    %57 = vector.broadcast %cst_32 : f32 to vector<8x256xf32>
    %58 = arith.maximumf %53, %57 : vector<8x256xf32>
    %59 = arith.divf %51, %58 : vector<8x256xf32>
    %60 = arith.subf %51, %59 : vector<8x256xf32>
    %61 = arith.mulf %53, %60 : vector<8x256xf32>
    %62 = arith.addf %59, %61 : vector<8x256xf32>
    %c0_33 = arith.constant 0 : index
    %c0_34 = arith.constant 0 : index
    %c1_35 = arith.constant 1 : index
    %c0_36 = arith.constant 0 : index
    %c0_37 = arith.constant 0 : index
    %63 = vector.load %arg4[%c0_33, %c0_34, %c1_35, %c0_36, %c0_37] : memref<1x3x2x8x256xf32, #tpu.memory_space<vmem>>, vector<1x1x1x8x256xf32>
    %64 = vector.shape_cast %63 : vector<1x1x1x8x256xf32> to vector<8x256xf32>
    %65 = vector.shape_cast %62 : vector<8x256xf32> to vector<1x1x1x8x256xf32>
    tpu.vector_store %arg4[%c0_33, %c0_34, %c1_35, %c0_36, %c0_37], %65 {strides = array<i32>} : memref<1x3x2x8x256xf32, #tpu.memory_space<vmem>>, vector<1x1x1x8x256xf32>,
    %66 = vector.extract_strided_slice %55 {offsets = [1, 0], sizes = [8, 256], strides = [1, 1]} : vector<12x256xf32> to vector<8x256xf32>
    %67 = arith.addf %51, %66 : vector<8x256xf32>
    %68 = vector.extract_strided_slice %55 {offsets = [3, 0], sizes = [8, 256], strides = [1, 1]} : vector<12x256xf32> to vector<8x256xf32>
    %69 = arith.addf %67, %68 : vector<8x256xf32>
    %70 = vector.extract_strided_slice %56 {offsets = [1, 0], sizes = [8, 256], strides = [1, 1]} : vector<12x256xf32> to vector<8x256xf32>
    %71 = arith.addf %53, %70 : vector<8x256xf32>
    %72 = vector.extract_strided_slice %56 {offsets = [3, 0], sizes = [8, 256], strides = [1, 1]} : vector<12x256xf32> to vector<8x256xf32>
    %73 = arith.addf %71, %72 : vector<8x256xf32>
    %cst_38 = arith.constant 1.000000e+00 : f32
    %74 = vector.broadcast %cst_38 : f32 to vector<8x256xf32>
    %75 = arith.maximumf %73, %74 : vector<8x256xf32>
    %76 = arith.divf %69, %75 : vector<8x256xf32>
    %77 = arith.subf %51, %76 : vector<8x256xf32>
    %78 = arith.mulf %53, %77 : vector<8x256xf32>
    %79 = arith.addf %76, %78 : vector<8x256xf32>
    %c0_39 = arith.constant 0 : index
    %c1_40 = arith.constant 1 : index
    %c1_41 = arith.constant 1 : index
    %c0_42 = arith.constant 0 : index
    %c0_43 = arith.constant 0 : index
    %80 = vector.load %arg4[%c0_39, %c1_40, %c1_41, %c0_42, %c0_43] : memref<1x3x2x8x256xf32, #tpu.memory_space<vmem>>, vector<1x1x1x8x256xf32>
    %81 = vector.shape_cast %80 : vector<1x1x1x8x256xf32> to vector<8x256xf32>
    %82 = vector.shape_cast %79 : vector<8x256xf32> to vector<1x1x1x8x256xf32>
    tpu.vector_store %arg4[%c0_39, %c1_40, %c1_41, %c0_42, %c0_43], %82 {strides = array<i32>} : memref<1x3x2x8x256xf32, #tpu.memory_space<vmem>>, vector<1x1x1x8x256xf32>,
    %83 = vector.extract_strided_slice %55 {offsets = [0, 0], sizes = [8, 256], strides = [1, 1]} : vector<12x256xf32> to vector<8x256xf32>
    %84 = arith.addf %69, %83 : vector<8x256xf32>
    %85 = vector.extract_strided_slice %55 {offsets = [4, 0], sizes = [8, 256], strides = [1, 1]} : vector<12x256xf32> to vector<8x256xf32>
    %86 = arith.addf %84, %85 : vector<8x256xf32>
    %87 = vector.extract_strided_slice %56 {offsets = [0, 0], sizes = [8, 256], strides = [1, 1]} : vector<12x256xf32> to vector<8x256xf32>
    %88 = arith.addf %73, %87 : vector<8x256xf32>
    %89 = vector.extract_strided_slice %56 {offsets = [4, 0], sizes = [8, 256], strides = [1, 1]} : vector<12x256xf32> to vector<8x256xf32>
    %90 = arith.addf %88, %89 : vector<8x256xf32>
    %cst_44 = arith.constant 1.000000e+00 : f32
    %91 = vector.broadcast %cst_44 : f32 to vector<8x256xf32>
    %92 = arith.maximumf %90, %91 : vector<8x256xf32>
    %93 = arith.divf %86, %92 : vector<8x256xf32>
    %94 = arith.subf %51, %93 : vector<8x256xf32>
    %95 = arith.mulf %53, %94 : vector<8x256xf32>
    %96 = arith.addf %93, %95 : vector<8x256xf32>
    %c0_45 = arith.constant 0 : index
    %c2_46 = arith.constant 2 : index
    %c1_47 = arith.constant 1 : index
    %c0_48 = arith.constant 0 : index
    %c0_49 = arith.constant 0 : index
    %97 = vector.load %arg4[%c0_45, %c2_46, %c1_47, %c0_48, %c0_49] : memref<1x3x2x8x256xf32, #tpu.memory_space<vmem>>, vector<1x1x1x8x256xf32>
    %98 = vector.shape_cast %97 : vector<1x1x1x8x256xf32> to vector<8x256xf32>
    %99 = vector.shape_cast %96 : vector<8x256xf32> to vector<1x1x1x8x256xf32>
    tpu.vector_store %arg4[%c0_45, %c2_46, %c1_47, %c0_48, %c0_49], %99 {strides = array<i32>} : memref<1x3x2x8x256xf32, #tpu.memory_space<vmem>>, vector<1x1x1x8x256xf32>,
    return
  }
  func.func @transform_0(%arg0: i32, %arg1: i32) -> (i32, i32, i32, i32) {
    %c0_i32 = arith.constant 0 : i32
    %c0_i32_0 = arith.constant 0 : i32
    %c0_i32_1 = arith.constant 0 : i32
    return %arg0, %c0_i32, %c0_i32_0, %arg1 : i32, i32, i32, i32
  }
  func.func @transform_1(%arg0: i32, %arg1: i32) -> (i32, i32, i32, i32) {
    %c0_i32 = arith.constant 0 : i32
    %c0_i32_0 = arith.constant 0 : i32
    %c0_i32_1 = arith.constant 0 : i32
    return %arg0, %c0_i32, %c0_i32_0, %arg1 : i32, i32, i32, i32
  }
  func.func @transform_2(%arg0: i32, %arg1: i32) -> (i32, i32, i32, i32, i32) {
    %c0_i32 = arith.constant 0 : i32
    %c0_i32_0 = arith.constant 0 : i32
    %c0_i32_1 = arith.constant 0 : i32
    %c0_i32_2 = arith.constant 0 : i32
    return %arg0, %c0_i32, %c0_i32_0, %c0_i32_1, %arg1 : i32, i32, i32, i32, i32
  }
}

</mosaic_0001>

<bundles_post_ra>
// kernel: tpu_custom_call.1
= control target key start
LH: loop header
LB: loop body
LE: loop exit
PB: predicated region body
PF: predicated region fallthrough
CT: control target
= control target key end

     0   :  { %7 = vsyncpa [#allocation3], 0  ;;  %s1330_s0 = inlined_call_operand.hbm [shape: f32[2,2,8,256], index: 0, kind: input, shape index: {}]   ;;  %s1331_s1 = inlined_call_operand.hbm [shape: f32[2,2,8,256], index: 1, kind: input, shape index: {}]   ;;  %s1332_s2 = inlined_call_operand.hbm [shape: f32[2,3,2,8,256], index: 2, kind: output, shape index: {}]  }
   0x1   :  { %9 = vsyncpa [#allocation3 + $0x1], 0 }
   0x2   :  { %10 = vsyncpa [#allocation6], 0 }
   0x3   :  { %12 = vsyncpa [#allocation6 + $0x1], 0 }
   0x4   :  { %13 = vsyncpa [#allocation4], 0 }
   0x5   :  { %15 = vsyncpa [#allocation4 + $0x1], 0  ;;  %s936_s9 = smov 0   ;;  %s938_s10 = smov 0  }
   0x6   :  { %s940_s11 = smov 0   ;;  %s942_s12 = smov 0  }
   0x7   :  { %s944_s13 = smov 0   ;;  %s946_s14 = smov 0  }
   0x8 LB: > { %s643_s15 = sadd.s32 4294967295, %s912_s14   ;;  %s644_s16 = sadd.s32 4294967294, %s912_s14   ;;  %s912_s14 = sphi %s946_s14, %s21_s14   ;;  %s908_s13 = sphi %s944_s13, %s1343_s13   ;;  %s904_s12 = sphi %s942_s12, %s1342_s12   ;;  %s900_s11 = sphi %s940_s11, %s1341_s11   ;;  %s896_s10 = sphi %s938_s10, %s1340_s10   ;;  %s892_s9 = sphi %s936_s9, %s1339_s9  }
   0x9   : > { %s33_s17 = sadd.s32 1, %s908_s13  ;;  %s42_s18 = sadd.s32 1, %s900_s11 }
   0xa   : > { %p35_p0 = scmp.ge.s32.totalorder %s33_s17, 2  ;;  %p49_p1 = scmp.ne.s32.totalorder %s900_s11, %s896_s10 }
   0xb   : > { %p50_p2 = scmp.eq.s32.totalorder %s912_s14, 0  ;;  %p55_p3 = scmp.ne.s32.totalorder %s896_s10, %s892_s9 }
   0xc   : > { %s1345_s17 = smov (%p35_p0, %s33_s17), 0  ;;  %p56_p5 = scmp.eq.s32.totalorder %s643_s15, 0 }
   0xd   : > { %p977_p4 = por %p50_p2, %p49_p1  ;;  %s37_s20 = ssub.s32 %s908_s13, %s1345_s17 }
   0xe   : > { %p109_p6 = scmp.eq.s32.totalorder %s643_s15, 1  ;;  %p40_p7 = scmp.eq.s32.totalorder %s37_s20, 0 }
   0xf   : > { %p983_p8 = por %p56_p5, %p55_p3  ;;  %p115_p10 = scmp.eq.s32.totalorder %s644_s16, 1 }
  0x10   : > { %p987_p9 = por %p109_p6, %p49_p1  ;;  %p646_p12 = scmp.ge.s32.totalorder %s912_s14, 2 }
  0x11   : > { %s992_s23 = scalar_select %p40_p7, %s900_s11, %s42_s18  }
  0x12   : > { %p994_p11 = por %p115_p10, %p55_p3  ;;  %p694_p13 = scmp.lt.s32.totalorder %s912_s14, 2 }
  0x13   : > { %s1001_s25 = sand.u32 1, %s900_s11   ;;  %s673_s27 = sshll.u32 %s908_s13, 9 }
  0x14   : > { %s647_s26 = sshll.u32 %s1001_s25, 5  ;;  %s147_s30 = scalar_lea.hbm %s1330_s0, %s673_s27 }
  0x15   : > { %s139_s3 = scalar_lea.vmem [#allocation2], %s647_s26  ;;  %p1014_p0 = pnand %p694_p13, %p977_p4 }
  0x16   : > { %s148_s4 = sshll.u32 %s139_s3, 4  ;;  %p653_p1 = scmp.ge.s32.totalorder %s912_s14, 1  ;;  %s149_s4 = int_to_ptr.vmem [resolvable:$true] %s148_s4 }
  0x17   : > { %s136_s6 = scalar_lea.sflag [#allocation3], %s1001_s25  ;;  %p774_p2 = pneg %p1014_p0 }
  0x18   : > { %s785_s7 = scalar_lea.vmem %s149_s4, 512  ;;  %s914_s8 = smov [#allocation2]  }
  0x19   : > { %p786_p3 = scmp.ne.s32.totalorder %s149_s4, %s785_s7  ;;  %s790_s15 = sshll.u32 %s914_s8, 4  ;;  %s791_s15 = int_to_ptr.vmem [resolvable:$false] %s790_s15 }
  0x1a   : > { %s792_s16 = scalar_lea.vmem %s791_s15, 1024  ;;  %p793_p4 = scmp.lt.s32.totalorder %s149_s4, %s791_s15 }
  0x1b   : > { %p788_p5 = pnand %p786_p3, %p774_p2  ;;  %p794_p7 = scmp.lt.s32.totalorder %s792_s16, %s785_s7 }
  0x1d   : > { %p789_p6 = pneg %p788_p5  ;;  %p795_p10 = por %p794_p7, %p793_p4 }
  0x1f   : > { %p796_p13 = pnand %p795_p10, %p789_p6 }
  0x21   : > { %799 = shalt.err (!%p796_p13)
}
  0x22   : > { %s915_s18 = smov 256   ;;  %s916_s19 = smov 16  }
  0x23   : > { %686 = dma.hbm_to_vmem [thread:$0]  (!%p1014_p0), %s147_s30, 512, %s149_s4, %s136_s6, %s915_s18, %s915_s18, %s916_s19  }
  0x24   : > { %p179_p3 = scmp.lt.s32.totalorder %s912_s14, 3  ;;  %s170_s29 = scalar_lea.hbm %s1331_s1, %s673_s27 }
  0x25   : > { %s162_s7 = scalar_lea.vmem [#allocation5], %s647_s26  ;;  %s159_s15 = scalar_lea.sflag [#allocation6], %s1001_s25 }
  0x26   : > { %p1035_p5 = pnand %p653_p1, %p179_p3  ;;  %s171_s8 = sshll.u32 %s162_s7, 4  ;;  %s172_s8 = int_to_ptr.vmem [resolvable:$true] %s171_s8 }
  0x27   : > { %s813_s16 = scalar_lea.vmem %s172_s8, 512  ;;  %s917_s30 = smov [#allocation5]  }
  0x28   : > { %p814_p6 = scmp.ne.s32.totalorder %s172_s8, %s813_s16  ;;  %s818_s4 = sshll.u32 %s917_s30, 4  ;;  %s819_s4 = int_to_ptr.vmem [resolvable:$false] %s818_s4 }
  0x29   : > { %s820_s27 = scalar_lea.vmem %s819_s4, 1024  ;;  %p821_p10 = scmp.lt.s32.totalorder %s172_s8, %s819_s4 }
  0x2a   : > { %p816_p4 = pnand %p814_p6, %p774_p2  ;;  %p822_p1 = scmp.lt.s32.totalorder %s820_s27, %s813_s16 }
  0x2c   : > { %p817_p7 = pneg %p816_p4  ;;  %p823_p13 = por %p822_p1, %p821_p10 }
  0x2e   : > { %p824_p3 = pnand %p823_p13, %p817_p7 }
  0x30   : > { %827 = shalt.err (!%p824_p3)
}
  0x31   : > { %689 = dma.hbm_to_vmem [thread:$0]  (!%p1014_p0), %s170_s29, 512, %s172_s8, %s159_s15, %s915_s18, %s915_s18, %s916_s19  }
  0x32   : > { %183 = sbr.rel (%p1035_p5) target bundleno = 142 (0x8e), region = 28  ;;  %s1050_s25 = sand.u32 (!%p1035_p5), 1, %s896_s10  }
  0x33   : > { %s654_s26 = sshll.u32 (!%p1035_p5), %s1050_s25, 5  ;;  %s186_s6 = scalar_lea.sflag (!%p1035_p5), [#allocation3], %s1050_s25 }
  0x34   : > { %s1054_s20 = scalar_lea.vmem (!%p1035_p5), [#allocation2], %s654_s26 }
  0x37   : > { %879 = dma.done.wait (%p983_p8), %s186_s6, 512  }
  0x38   : > { %881 = vsyncadd (%p983_p8), %s186_s6, 4294966784  ;;  %s195_s5 = scalar_lea.sflag [#allocation6], %s1050_s25  ;;  %s1061_s18 = scalar_lea.vmem [#allocation5], %s654_s26 }
  0x39   : > { %883 = dma.done.wait (%p983_p8), %s195_s5, 512  }
  0x3a   : > { %885 = vsyncadd (%p983_p8), %s195_s5, 4294966784  ;;  %v1068_v0 = vld [vmem:[%s1054_s20] sm:$0xff]  ;;  %vm237_vm0 = vcmask 1041408   ;;  %v1074_v2 = vld [vmem:[%s1054_s20 + $0x8] sm:$0xff]  ;;  %vm270_vm1 = vcmask 1046528   ;;  %vm281_vm2 = vcmask 1044480  }
  0x3b   : > { %v1071_v1 = vld [vmem:[%s1061_s18] sm:$0xff]  ;;  %v1079_v5 = vld [vmem:[%s1061_s18 + $0x8] sm:$0xff]  ;;  %v233_v6 = vrot.slane %v1068_v0, 6  ;;  %v234_v9 = vrot.slane %v1074_v2, 6  ;;  %v1126_v43 = vld [vmem:[%s1054_s20 + $0x10] sm:$0xff]  ;;  %vm333_vm3 = vcmask 1043456  }
  0x3c   : > { %v244_v3 = vrot.slane %v1071_v1, 6  ;;  %v252_v4 = vmax.f32 %v1071_v1, 1.0  ;;  %v245_v7 = vrot.slane %v1079_v5, 6  ;;  %v253_v8 = vmax.f32 %v1079_v5, 1.0  ;;  %v1136_v57 = vld [vmem:[%s1061_s18 + $0x10] sm:$0xff]  ;;  %v1143_v62 = vld [vmem:[%s1061_s18 + $0x18] sm:$0xff] }
  0x3d   : > { %v1088_v12 = vsel %vm237_vm0, 0.0, %v233_v6  ;;  %v1099_v19 = vsel %vm237_vm0, %v233_v6, 0.0  ;;  %v1110_v30 = vsel %vm237_vm0, 0.0, %v234_v9  ;;  %v1113_v31 = vsel %vm237_vm0, %v234_v9, 0.0  ;;  %s675_s21 = smul.u32 96, %s1050_s25  ;;  %s515_s15 = scalar_lea.sflag [#allocation4], %s1050_s25 }
  0x3e   : > { %v248_v10 = vsel %vm237_vm0, 0.0, %v244_v3  ;;  %v250_v11 = vsel %vm237_vm0, %v244_v3, 0.0  ;;  %748 = vrcp.f32 %v252_v4  ;;  %v1091_v15 = vsel %vm237_vm0, 0.0, %v245_v7  ;;  %s676_s28 = smul.u32 1536, %s904_s12  ;;  %s918_s16 = smov [#allocation7]  }
  0x3f   : > { %v296_v13 = vrot.slane %v248_v10, 1  ;;  %v297_v14 = vrot.slane %v250_v11, 1  ;;  %v1094_v16 = vsel %vm237_vm0, %v245_v7, 0.0  ;;  %750 = vrcp.f32 %v253_v8  ;;  %s1173_s19 = scalar_lea.vmem [#allocation7], %s675_s21  ;;  %s832_s30 = sshll.u32 %s918_s16, 4  ;;  %s833_s30 = int_to_ptr.vmem [resolvable:$false] %s832_s30 }
  0x40   : > { %v299_v17 = vrot.slane %v1091_v15, 1  ;;  %v300_v18 = vrot.slane %v1094_v16, 1  ;;  %v271_v21 = vrot.slane %v1088_v12, 1  ;;  %v272_v22 = vrot.slane %v1099_v19, 1  ;;  %s530_s29 = sshll.u32 %s1173_s19, 4  ;;  %s1279_s8 = scalar_lea.hbm %s1332_s2, %s676_s28  ;;  %s1281_s29 = int_to_ptr.vmem [resolvable:$true] %s530_s29 }
  0x41   : > { %v298_v20 = vsel %vm270_vm1, %v296_v13, %v297_v14  ;;  %v282_v23 = vrot.slane %v1088_v12, 3  ;;  %v283_v26 = vrot.slane %v1099_v19, 3  ;;  %v306_v27 = vrot.slane %v248_v10, 3  ;;  %s828_s12 = scalar_lea.vmem %s1281_s29, 1536  ;;  %s834_s4 = scalar_lea.vmem %s833_s30, 3072 }
  0x42   : > { %v304_v24 = vadd.f32 %v298_v20, %v1071_v1  ;;  %v301_v25 = vsel %vm270_vm1, %v299_v17, %v300_v18  ;;  %v273_v28 = vsel %vm270_vm1, %v271_v21, %v272_v22  ;;  %v307_v29 = vrot.slane %v250_v11, 3  ;;  %p829_p8 = scmp.ne.s32.totalorder %s1281_s29, %s828_s12  ;;  %p835_p5 = scmp.lt.s32.totalorder %s1281_s29, %s833_s30 }
  0x43   : > { %v305_v32 = vadd.f32 %v301_v25, %v1079_v5  ;;  %v279_v33 = vadd.f32 %v273_v28, %v1068_v0  ;;  %v284_v35 = vsel %vm281_vm2, %v282_v23, %v283_v26  ;;  %v309_v37 = vrot.slane %v1091_v15, 3  ;;  %p836_p6 = scmp.lt.s32.totalorder %s834_s4, %s828_s12 }
  0x44   : > { %v308_v34 = vsel %vm281_vm2, %v306_v27, %v307_v29  ;;  %v310_v38 = vrot.slane %v1094_v16, 3  ;;  %v274_v39 = vrot.slane %v1110_v30, 1  ;;  %v275_v40 = vrot.slane %v1113_v31, 1  ;;  %p830_p0 = pnand %p829_p8, %p987_p9 }
  0x45   : > { %v314_v36 = vadd.f32 %v308_v34, %v304_v24  ;;  %v285_v41 = vrot.slane %v1110_v30, 3  ;;  %v286_v42 = vrot.slane %v1113_v31, 3  ;;  %v346_v48 = vrot.slane %v248_v10, 4  ;;  %p837_p4 = por %p836_p6, %p835_p5 }
  0x46   : > { %v311_v45 = vsel %vm281_vm2, %v309_v37, %v310_v38  ;;  %v1129_v49 = vadd.f32 %v284_v35, %v279_v33  ;;  %v347_v50 = vrot.slane %v250_v11, 4  ;;  %v379_v51 = vrot.slane %v1126_v43, 6  ;;  %p831_p2 = pneg %p830_p0 }
  0x47   : > { %v316_v44 = vmax.f32 %v314_v36, 1.0  ;;  %v315_v46 = vadd.f32 %v311_v45, %v305_v32  ;;  %v344_v47 = vadd.f32 %v314_v36, %v248_v10  ;;  %v276_v53 = vsel %vm270_vm1, %v274_v39, %v275_v40 }
  0x48   : > { %v287_v54 = vsel %vm281_vm2, %v285_v41, %v286_v42  ;;  %v334_v56 = vrot.slane %v1088_v12, 4  ;;  %v348_v59 = vsel %vm333_vm3, %v346_v48, %v347_v50  ;;  %v349_v61 = vrot.slane %v1091_v15, 4  ;;  %p838_p7 = pnand %p837_p4, %p831_p2 }
  0x49   : > { %752 = vrcp.f32 %v316_v44  ;;  %v317_v55 = vmax.f32 %v315_v46, 1.0  ;;  %v345_v60 = vadd.f32 %v315_v46, %v1091_v15  ;;  %v335_v3 = vrot.slane %v1099_v19, 4 }
  0x4a   : > { %v354_v4 = vadd.f32 %v348_v59, %v344_v47  ;;  %v350_v6 = vrot.slane %v1094_v16, 4  ;;  %v280_v9 = vadd.f32 %v276_v53, %v1074_v2  ;;  %v389_v10 = vrot.slane %v1136_v57, 6 }
  0x4b   : > { %v749_v52 = vpop.eup %748  ;;  %754 = vrcp.f32 %v317_v55  ;;  %v397_v14 = vmax.f32 %v1136_v57, 1.0  ;;  %v390_v15 = vrot.slane %v1143_v62, 6  ;;  %v398_v29 = vmax.f32 %v1143_v62, 1.0 }
  0x4c   : > { %v255_v58 = vmul.f32 %v749_v52, %v1068_v0  ;;  %v751_v63 = vpop.eup %750  ;;  %v356_v11 = vmax.f32 %v354_v4, 1.0  ;;  %v351_v13 = vsel %vm333_vm3, %v349_v61, %v350_v6  ;;  %v1158_v19 = vsel %vm237_vm0, 0.0, %v389_v10  ;;  %v1200_v52 = vld [vmem:[%s1054_s20 + $0x18] sm:$0xff] }
  0x4d   : > { %v257_v8 = vmul.f32 %v751_v63, %v1074_v2  ;;  %v355_v16 = vadd.f32 %v351_v13, %v345_v60  ;;  %v1161_v20 = vsel %vm237_vm0, %v389_v10, 0.0  ;;  %v440_v21 = vrot.slane %v1158_v19, 1 }
  0x4e   : > { %v258_v7 = vsub.f32 %v1068_v0, %v255_v58  ;;  %756 = vrcp.f32 %v356_v11  ;;  %v1165_v22 = vsel %vm237_vm0, 0.0, %v390_v15  ;;  %v291_v26 = vadd.f32 %v287_v54, %v280_v9 }
  0x4f   : > { %v259_v18 = vsub.f32 %v1074_v2, %v257_v8  ;;  %v357_v25 = vmax.f32 %v355_v16, 1.0  ;;  %758 = vrcp.f32 %v397_v14  ;;  %v441_v27 = vrot.slane %v1161_v20, 1 }
  0x50   : > { %v260_v17 = vmul.f32 %v258_v7, %v1071_v1  ;;  %v1170_v28 = vsel %vm237_vm0, %v390_v15, 0.0  ;;  %v443_v33 = vrot.slane %v1165_v22, 1  ;;  %v1180_v36 = vsel %vm237_vm0, 0.0, %v379_v51 }
  0x51   : > { %v261_v24 = vmul.f32 %v259_v18, %v1079_v5  ;;  %760 = vrcp.f32 %v357_v25  ;;  %v444_v34 = vrot.slane %v1170_v28, 1  ;;  %v442_v35 = vsel %vm270_vm1, %v440_v21, %v441_v27 }
  0x52   : > { %v262_v23 = vadd.f32 %v260_v17, %v255_v58  ;;  %762 = vrcp.f32 %v398_v29  ;;  %v1183_v37 = vsel %vm237_vm0, %v379_v51, 0.0  ;;  %v337_v38 = vrot.slane %v1110_v30, 4 }
  0x53   : > { %v263_v32 = vadd.f32 %v261_v24, %v257_v8  ;;  %v338_v39 = vrot.slane %v1113_v31, 4  ;;  %v448_v40 = vadd.f32 %v1136_v57, %v442_v35  ;;  %v331_v42 = vadd.f32 %v1129_v49, %v1088_v12 }
  0x54   : > { %264 = vst [vmem:[%s1173_s19] sm:$0xff] %v262_v23  ;;  %v336_v44 = vsel %vm333_vm3, %v334_v56, %v335_v3  ;;  %v450_v45 = vrot.slane %v1158_v19, 3  ;;  %v451_v46 = vrot.slane %v1161_v20, 3  ;;  %v445_v48 = vsel %vm270_vm1, %v443_v33, %v444_v34 }
  0x55   : > { %265 = vst [vmem:[%s1173_s19 + $0x8] sm:$0xff] %v263_v32  ;;  %v416_v50 = vrot.slane %v1180_v36, 1  ;;  %v417_v31 = vrot.slane %v1183_v37, 1  ;;  %v332_v51 = vadd.f32 %v291_v26, %v1110_v30  ;;  %v453_v53 = vrot.slane %v1165_v22, 3 }
  0x56   : > { %v753_v41 = vpop.eup %752  ;;  %v452_v12 = vsel %vm281_vm2, %v450_v45, %v451_v46  ;;  %v454_v54 = vrot.slane %v1170_v28, 3  ;;  %v342_v60 = vadd.f32 %v336_v44, %v331_v42  ;;  %v449_v61 = vadd.f32 %v1143_v62, %v445_v48 }
  0x57   : > { %v319_v47 = vmul.f32 %v753_v41, %v1129_v49  ;;  %v339_v49 = vsel %vm333_vm3, %v337_v38, %v338_v39  ;;  %v458_v58 = vadd.f32 %v452_v12, %v448_v40  ;;  %v418_v63 = vsel %vm270_vm1, %v416_v50, %v417_v31 }
  0x58   : > { %v755_v55 = vpop.eup %754  ;;  %v380_v4 = vrot.slane %v1200_v52, 6  ;;  %v343_v7 = vadd.f32 %v339_v49, %v332_v51  ;;  %v455_v8 = vsel %vm281_vm2, %v453_v53, %v454_v54  ;;  %v426_v11 = vrot.slane %v1180_v36, 3 }
  0x59   : > { %v322_v56 = vsub.f32 %v1068_v0, %v319_v47  ;;  %v321_v59 = vmul.f32 %v755_v55, %v291_v26  ;;  %v460_v3 = vmax.f32 %v458_v58, 1.0  ;;  %v427_v13 = vrot.slane %v1183_v37, 3 }
  0x5a   : > { %v424_v18 = vadd.f32 %v1126_v43, %v418_v63  ;;  %v459_v16 = vadd.f32 %v455_v8, %v449_v61  ;;  %v1220_v23 = vsel %vm237_vm0, 0.0, %v380_v4  ;;  %v1223_v24 = vsel %vm237_vm0, %v380_v4, 0.0 }
  0x5b   : > { %v324_v30 = vmul.f32 %v322_v56, %v1071_v1  ;;  %v323_v6 = vsub.f32 %v1074_v2, %v321_v59  ;;  %v757_v9 = vpop.eup %756  ;;  %764 = vrcp.f32 %v460_v3  ;;  %v487_v25 = vadd.f32 %v458_v58, %v1158_v19 }
  0x5c   : > { %v759_v14 = vpop.eup %758  ;;  %v359_v17 = vmul.f32 %v757_v9, %v342_v60  ;;  %v461_v32 = vmax.f32 %v459_v16, 1.0  ;;  %v489_v33 = vrot.slane %v1158_v19, 4  ;;  %v428_v39 = vsel %vm281_vm2, %v426_v11, %v427_v13 }
  0x5d   : > { %v326_v10 = vadd.f32 %v324_v30, %v319_v47  ;;  %v325_v15 = vmul.f32 %v323_v6, %v1079_v5  ;;  %v400_v21 = vmul.f32 %v759_v14, %v1126_v43  ;;  %v490_v40 = vrot.slane %v1161_v20, 4 }
  0x5e   : > { %v761_v26 = vpop.eup %760  ;;  %v362_v29 = vsub.f32 %v1068_v0, %v359_v17  ;;  %v419_v44 = vrot.slane %v1220_v23, 1  ;;  %766 = vrcp.f32 %v461_v32  ;;  %v420_v45 = vrot.slane %v1223_v24, 1 }
  0x5f   : > { %656 = vst [vmem:[%s1173_s19 + $0x20] sm:$0xff] %v326_v10  ;;  %v327_v27 = vadd.f32 %v325_v15, %v321_v59  ;;  %v763_v34 = vpop.eup %762  ;;  %v361_v35 = vmul.f32 %v761_v26, %v343_v7  ;;  %v403_v38 = vsub.f32 %v1126_v43, %v400_v21  ;;  %v491_v46 = vsel %vm333_vm3, %v489_v33, %v490_v40 }
  0x60   : > { %v364_v41 = vmul.f32 %v362_v29, %v1071_v1  ;;  %v402_v42 = vmul.f32 %v763_v34, %v1200_v52  ;;  %v429_v1 = vrot.slane %v1220_v23, 3  ;;  %v497_v48 = vadd.f32 %v491_v46, %v487_v25 }
  0x61   : > { %657 = vst [vmem:[%s1173_s19 + $0x28] sm:$0xff] %v327_v27  ;;  %v363_v0 = vsub.f32 %v1074_v2, %v361_v35  ;;  %v405_v19 = vmul.f32 %v1136_v57, %v403_v38  ;;  %v430_v51 = vrot.slane %v1223_v24, 3  ;;  %v488_v2 = vadd.f32 %v459_v16, %v1165_v22 }
  0x62   : > { %v366_v47 = vadd.f32 %v364_v41, %v359_v17  ;;  %v404_v20 = vsub.f32 %v1200_v52, %v402_v42  ;;  %v499_v53 = vmax.f32 %v497_v48, 1.0  ;;  %v492_v54 = vrot.slane %v1165_v22, 4 }
  0x63   : > { %v365_v50 = vmul.f32 %v363_v0, %v1079_v5  ;;  %v407_v31 = vadd.f32 %v405_v19, %v400_v21  ;;  %v493_v55 = vrot.slane %v1170_v28, 4  ;;  %v421_v49 = vsel %vm270_vm1, %v419_v44, %v420_v45 }
  0x64   : > { %658 = vst [vmem:[%s1173_s19 + $0x40] sm:$0xff] %v366_v47  ;;  %v406_v12 = vmul.f32 %v1143_v62, %v404_v20  ;;  %768 = vrcp.f32 %v499_v53  ;;  %v434_v59 = vadd.f32 %v428_v39, %v424_v18  ;;  %v425_v30 = vadd.f32 %v1200_v52, %v421_v49 }
  0x65   : > { %v367_v56 = vadd.f32 %v365_v50, %v361_v35  ;;  %664 = vst [vmem:[%s1173_s19 + $0x10] sm:$0xff] %v407_v31  ;;  %v494_v5 = vsel %vm333_vm3, %v492_v54, %v493_v55  ;;  %v431_v63 = vsel %vm281_vm2, %v429_v1, %v430_v51  ;;  %v477_v28 = vrot.slane %v1180_v36, 4 }
  0x66   : > { %v408_v58 = vadd.f32 %v406_v12, %v402_v42  ;;  %v498_v60 = vadd.f32 %v494_v5, %v488_v2  ;;  %v478_v3 = vrot.slane %v1183_v37, 4  ;;  %v435_v7 = vadd.f32 %v431_v63, %v425_v30 }
  0x67   : > { %659 = vst [vmem:[%s1173_s19 + $0x48] sm:$0xff] %v367_v56  ;;  %v475_v8 = vadd.f32 %v434_v59, %v1180_v36  ;;  %v480_v14 = vrot.slane %v1220_v23, 4  ;;  %v481_v15 = vrot.slane %v1223_v24, 4 }
  0x68   : > { %v765_v61 = vpop.eup %764  ;;  %665 = vst [vmem:[%s1173_s19 + $0x18] sm:$0xff] %v408_v58  ;;  %v500_v4 = vmax.f32 %v498_v60, 1.0  ;;  %v479_v11 = vsel %vm333_vm3, %v477_v28, %v478_v3  ;;  %v476_v36 = vadd.f32 %v435_v7, %v1220_v23 }
  0x69   : > { %v463_v22 = vmul.f32 %v765_v61, %v434_v59  ;;  %v485_v18 = vadd.f32 %v479_v11, %v475_v8  ;;  %v482_v21 = vsel %vm333_vm3, %v480_v14, %v481_v15 }
  0x6a   : > { %770 = vrcp.f32 %v500_v4  ;;  %v486_v29 = vadd.f32 %v482_v21, %v476_v36 }
  0x6b   : > { %v466_v6 = vsub.f32 %v1126_v43, %v463_v22  ;;  %v767_v9 = vpop.eup %766 }
  0x6c   : > { %v465_v13 = vmul.f32 %v767_v9, %v435_v7 }
  0x6d   : > { %v468_v10 = vmul.f32 %v1136_v57, %v466_v6 }
  0x6e   : > { %v467_v37 = vsub.f32 %v1200_v52, %v465_v13 }
  0x6f   : > { %v470_v17 = vadd.f32 %v468_v10, %v463_v22 }
  0x70   : > { %v469_v16 = vmul.f32 %v1143_v62, %v467_v37 }
  0x71   : > { %666 = vst [vmem:[%s1173_s19 + $0x30] sm:$0xff] %v470_v17  ;;  %v769_v25 = vpop.eup %768 }
  0x72   : > { %v471_v26 = vadd.f32 %v469_v16, %v465_v13  ;;  %v502_v27 = vmul.f32 %v769_v25, %v485_v18 }
  0x74   : > { %667 = vst [vmem:[%s1173_s19 + $0x38] sm:$0xff] %v471_v26  ;;  %v505_v24 = vsub.f32 %v1126_v43, %v502_v27 }
  0x76   : > { %v507_v33 = vmul.f32 %v1136_v57, %v505_v24 }
  0x77   : > { %v771_v32 = vpop.eup %770 }
  0x78   : > { %v504_v34 = vmul.f32 %v771_v32, %v486_v29  ;;  %v509_v23 = vadd.f32 %v507_v33, %v502_v27 }
  0x7a   : > { %v506_v35 = vsub.f32 %v1200_v52, %v504_v34  ;;  %668 = vst [vmem:[%s1173_s19 + $0x50] sm:$0xff] %v509_v23 }
  0x7c   : > { %v508_v38 = vmul.f32 %v1143_v62, %v506_v35 }
  0x7e   : > { %v510_v39 = vadd.f32 %v508_v38, %v504_v34 }
  0x80   : > { %669 = vst [vmem:[%s1173_s19 + $0x58] sm:$0xff] %v510_v39 }
  0x81   : > { %841 = shalt.err (!%p838_p7)
}
  0x82   : > { %s842_s27 = scalar_lea.hbm %s1279_s8, 1536  ;;  %s846_s20 = scalar_lea.hbm %s1332_s2, 3072 }
  0x83   : > { %p843_p10 = scmp.ne.s32.totalorder %s1279_s8, %s842_s27  ;;  %p847_p3 = scmp.lt.s32.totalorder %s1279_s8, %s1332_s2 }
  0x84   : > { %p848_p8 = scmp.lt.s32.totalorder %s846_s20, %s842_s27 }
  0x85   : > { %p844_p1 = pnand %p843_p10, %p987_p9 }
  0x86   : > { %p849_p0 = por %p848_p8, %p847_p3 }
  0x87   : > { %p845_p13 = pneg %p844_p1 }
  0x89   : > { %p850_p2 = pnand %p849_p0, %p845_p13 }
  0x8b   : > { %853 = shalt.err (!%p850_p2)
}
  0x8c   : > { %s919_s21 = smov 256   ;;  %s920_s19 = smov 16  }
  0x8d   : > { %681 = dma.vmem_to_hbm [thread:$0]  (%p987_p9), %s1281_s29, 1536, %s1279_s8, %s515_s15, %s919_s21, %s919_s21, %s920_s19  }
  0x8e PF: > { %s545_s28 = sand.u32 1, %s892_s9   ;;  %p691_p5 = pnand %p646_p12, %p994_p11 }
  0x8f   : > { %s546_s3 = scalar_lea.sflag [#allocation4], %s545_s28 }
  0x90   : > { %p692_p6 = pneg %p691_p5 }
  0x92   : > { %887 = dma.done.wait (%p692_p6), %s546_s3, 1536  }
  0x93   : > { %889 = vsyncadd (%p692_p6), %s546_s3, 4294965760  ;;  %s21_s14 = sadd.s32 1, %s912_s14   ;;  %s1339_s9 = smov %s896_s10 }
  0x94   : > { %p18_p4 = scmp.ge.s32.totalorder %s21_s14, 4   ;;  %s1340_s10 = smov %s900_s11 }
  0x95   : > { %s1341_s11 = smov %s992_s23  ;;  %s1342_s12 = smov %s908_s13 }
  0x96   : > { %s1343_s13 = smov %s1345_s17  ;;  %20 = sbr.rel (!%p18_p4) target bundleno = 8 (0x8), region = 93 }
  0x9b   :  { %551 = vsyncpa [#allocation3], 1 }
  0x9c   :  { %553 = vsyncpa [#allocation3 + $0x1], 1 }
  0x9d   :  { %554 = vsyncpa [#allocation6], 1 }
  0x9e   :  { %556 = vsyncpa [#allocation6 + $0x1], 1 }
  0x9f   :  { %557 = vsyncpa [#allocation4], 1 }
  0xa0   :  { %559 = vsyncpa [#allocation4 + $0x1], 1 }

</bundles_post_ra>
